<compile_context>
chip_gen: v5e
topology: v5e:2x2
jax: 0.10.0
libtpu: 0.0.40
codegen_flags: <defaults>
</compile_context>

<pallas_src>
import jax
import jax.numpy as jnp
from jax.experimental import pallas as pl
from jax.experimental.pallas import tpu as pltpu


def _round_up(x, m):
    return ((x + m - 1) // m) * m


def _linear_kernel(x_ref, w_ref, b_ref, o_ref):
    # o = x @ w + b   (MXU matmul, f32 accumulation, bias broadcast over rows)
    acc = jnp.dot(x_ref[...], w_ref[...], preferred_element_type=jnp.float32)
    o_ref[...] = (acc + b_ref[...]).astype(o_ref.dtype)


def _packed_linear(x_pk, w_pk, b_pk, *, tm, out_dtype):
    """x_pk: (R, K), w_pk: (K, M), b_pk: (1, M) -> (R, M); row-tiled along R."""
    r, k = x_pk.shape
    m = w_pk.shape[1]

    # TM: multiple of 8 sublanes, never larger than the (8-aligned) problem itself.
    tm = max(8, min(tm, _round_up(r, 8)))
    grid = (pl.cdiv(r, tm),)  # ragged last tile is masked by Pallas (no pad / slice)

    cost = pl.CostEstimate(
        flops=2 * r * k * m,
        transcendentals=0,
        bytes_accessed=(r * k * x_pk.dtype.itemsize
                        + k * m * w_pk.dtype.itemsize
                        + m * b_pk.dtype.itemsize
                        + r * m * jnp.dtype(out_dtype).itemsize),
    )

    return pl.pallas_call(
        _linear_kernel,
        out_shape=jax.ShapeDtypeStruct((r, m), out_dtype),
        grid=grid,
        in_specs=[
            pl.BlockSpec((tm, k), lambda i: (i, 0)),   # row tile, double-buffered DMA
            pl.BlockSpec((k, m), lambda i: (0, 0)),    # block-diag W: VMEM-resident
            pl.BlockSpec((1, m), lambda i: (0, 0)),    # bias: VMEM-resident
        ],
        out_specs=pl.BlockSpec((tm, m), lambda i: (i, 0)),
        compiler_params=pltpu.CompilerParams(
            # Independent row tiles -> shard across both TensorCores on v7x.
            dimension_semantics=("parallel",),
            # Covers TM=4096 f32 double-buffers (~12.3 MiB) on every generation.
            vmem_limit_bytes=32 * 1024 * 1024,
        ),
        cost_estimate=cost,
    )(x_pk, w_pk, b_pk)


def point_distributed_forward(x, w, b, *, tm=4096, pack=8, out_dtype=None):
    """Exactly mirrors PointDistributed.forward with module = Linear(w, b).

    x: any-rank tensor (..., D_in) -> (..., D_out).
    w: (D_in, D_out)  (math layout; PyTorch stores (out, in) -- transpose before passing).
    b: (D_out,) or (1, D_out).
    pack: points packed per lane-dense row (8 default; use 4 on v5e with f32 inputs).
    out_dtype: output dtype (default x.dtype); pass bf16 to halve the output HBM stream.
    """
    original = list(x.shape)
    d_in = original[-1]
    d_out = w.shape[1]
    out_dtype = x.dtype if out_dtype is None else jnp.dtype(out_dtype)

    if b.ndim == 1:                      # normalize PyTorch-convention (d_out,) bias
        b = b.reshape(1, d_out)

    n = 1
    for s in original[:-1]:
        n *= s

    # Largest packing factor (<= pack) that divides N so both reshapes stay free views.
    p = 1
    for cand in (8, 4, 2):
        if cand <= pack and n % cand == 0:
            p = cand
            break

    # Lane-dense packing: p points per packed row.
    x_pk = x.reshape(n // p, p * d_in)               # free row-major view: (N/p, p*D_in)
    w_pk = jnp.kron(jnp.eye(p, dtype=w.dtype), w)    # tiny block-diagonal (p*D_in, p*D_out)
    b_pk = jnp.tile(b, (1, p))                       # (1, p*D_out)

    y_pk = _packed_linear(x_pk, w_pk, b_pk, tm=tm, out_dtype=out_dtype)

    # y.view(original[:-1] + [-1]) -- free row-major view back to (..., D_out).
    return y_pk.reshape(original[:-1] + [d_out])


if __name__ == "__main__":
    # Small shapes consistent with the module's forward:
    #   x: (batch=2, channels=4, spatial=16, features=16)
    #   wrapped module: Linear(in_features=16, out_features=32)
    B, C, H, D_IN, D_OUT = 2, 4, 16, 16, 32

    key = jax.random.PRNGKey(0)
    kx, kw, kb = jax.random.split(key, 3)
    x = jax.random.normal(kx, (B, C, H, D_IN), dtype=jnp.float32)
    # Math-friendly (in, out) weight layout so y = x @ W + b.
    w = (jax.random.normal(kw, (D_IN, D_OUT), dtype=jnp.float32)
         * (1.0 / jnp.sqrt(D_IN)))
    b = jax.random.normal(kb, (D_OUT,), dtype=jnp.float32) * 0.01  # PyTorch-style 1-D bias

    # Plain-JAX reference (identical to the PyTorch forward).
    ref = (x.reshape(-1, D_IN) @ w + b).reshape(B, C, H, D_OUT)

    # 1) Main path: lane-dense 8-point packing (N = 128 divisible by 8).
    y = point_distributed_forward(x, w, b)
    jax.block_until_ready(y)
    assert y.shape == (B, C, H, D_OUT), y.shape
    assert jnp.allclose(y, ref, atol=1e-4, rtol=1e-4)

    # 2) Ragged point count (N = 15): exercises the packing fallback + masked edge tile
    #    (no pad / slice is ever emitted).
    x_tail = jax.random.normal(kx, (3, 5, D_IN), dtype=jnp.float32)
    ref_tail = (x_tail.reshape(-1, D_IN) @ w + b).reshape(3, 5, D_OUT)
    y_tail = point_distributed_forward(x_tail, w, b)
    jax.block_until_ready(y_tail)
    assert y_tail.shape == (3, 5, D_OUT), y_tail.shape
    assert jnp.allclose(y_tail, ref_tail, atol=1e-4, rtol=1e-4)

    print("KERNEL_OK")
</pallas_src>

<mosaic_0001>
module attributes {stable_mosaic.version = 11 : i64} {
  func.func @_linear_kernel(%arg0: i32, %arg1: memref<16x128xf32, #tpu.memory_space<vmem>>, %arg2: memref<128x256xf32, #tpu.memory_space<vmem>>, %arg3: memref<1x256xf32, #tpu.memory_space<vmem>>, %arg4: memref<16x256xf32, #tpu.memory_space<vmem>>) attributes {dimension_semantics = [#tpu.dimension_semantics<parallel>], iteration_bounds = array<i64: 1>, scalar_prefetch = 0 : i64, scratch_operands = 0 : i64, tpu.core_type = #tpu.core_type<tc>, window_params = [{transform_indices = @transform_0, window_bounds = array<i64: 16, 128>}, {pipeline_mode = #tpu.pipeline_mode<synchronous>, transform_indices = @transform_1, window_bounds = array<i64: 128, 256>}, {pipeline_mode = #tpu.pipeline_mode<synchronous>, transform_indices = @transform_2, window_bounds = array<i64: 1, 256>}, {transform_indices = @transform_3, window_bounds = array<i64: 16, 256>}]} {
    %c0 = arith.constant 0 : index
    %c0_0 = arith.constant 0 : index
    %0 = vector.load %arg1[%c0, %c0_0] : memref<16x128xf32, #tpu.memory_space<vmem>>, vector<16x128xf32>
    %c0_1 = arith.constant 0 : index
    %c0_2 = arith.constant 0 : index
    %1 = vector.load %arg2[%c0_1, %c0_2] : memref<128x256xf32, #tpu.memory_space<vmem>>, vector<128x256xf32>
    %cst = arith.constant dense<0.000000e+00> : vector<16x256xf32>
    %2 = tpu.matmul %0, %1, %cst {dimension_numbers = #tpu.dot_dimension_numbers<[1], [0], [0], [1], [0, 0, 1, 1], [], []>} : vector<16x128xf32>, vector<128x256xf32>, vector<16x256xf32> -> vector<16x256xf32>
    %c0_3 = arith.constant 0 : index
    %c0_4 = arith.constant 0 : index
    %3 = vector.load %arg3[%c0_3, %c0_4] : memref<1x256xf32, #tpu.memory_space<vmem>>, vector<1x256xf32>
    %4 = vector.broadcast %3 : vector<1x256xf32> to vector<16x256xf32>
    %5 = arith.addf %2, %4 : vector<16x256xf32>
    %c0_5 = arith.constant 0 : index
    %c0_6 = arith.constant 0 : index
    %6 = vector.load %arg4[%c0_5, %c0_6] : memref<16x256xf32, #tpu.memory_space<vmem>>, vector<16x256xf32>
    tpu.vector_store %arg4[%c0_5, %c0_6], %5 {strides = array<i32>} : memref<16x256xf32, #tpu.memory_space<vmem>>, vector<16x256xf32>,
    return
  }
  func.func @transform_0(%arg0: i32) -> (i32, i32) {
    %c0_i32 = arith.constant 0 : i32
    %c0_i32_0 = arith.constant 0 : i32
    return %arg0, %c0_i32 : i32, i32
  }
  func.func @transform_1(%arg0: i32) -> (i32, i32) {
    %c0_i32 = arith.constant 0 : i32
    %c0_i32_0 = arith.constant 0 : i32
    %c0_i32_1 = arith.constant 0 : i32
    return %c0_i32, %c0_i32_0 : i32, i32
  }
  func.func @transform_2(%arg0: i32) -> (i32, i32) {
    %c0_i32 = arith.constant 0 : i32
    %c0_i32_0 = arith.constant 0 : i32
    %c0_i32_1 = arith.constant 0 : i32
    return %c0_i32, %c0_i32_0 : i32, i32
  }
  func.func @transform_3(%arg0: i32) -> (i32, i32) {
    %c0_i32 = arith.constant 0 : i32
    %c0_i32_0 = arith.constant 0 : i32
    return %arg0, %c0_i32 : i32, i32
  }
}

</mosaic_0001>

<bundles_post_ra>
// kernel: tpu_custom_call.1
= control target key start
LH: loop header
LB: loop body
LE: loop exit
PB: predicated region body
PF: predicated region fallthrough
CT: control target
= control target key end

     0   :  { %8 = vsyncpa [#allocation3], 0  ;;  %s358_s0 = inlined_call_operand.hbm [shape: f32[16,128], index: 0, kind: input, shape index: {}]   ;;  %s359_s1 = inlined_call_operand.hbm [shape: f32[128,256], index: 1, kind: input, shape index: {}]   ;;  %s360_s2 = inlined_call_operand.hbm [shape: f32[1,256], index: 2, kind: input, shape index: {}]   ;;  %s361_s3 = inlined_call_operand.hbm [shape: f32[16,256], index: 3, kind: output, shape index: {}]  }
   0x1   :  { %9 = vsyncpa [#allocation6], 0  ;;  %s28_s14 = sshll.u32 %s359_s1, 4  ;;  %s29_s14 = int_to_ptr.hbm [resolvable:$true] %s28_s14 }
   0x2   :  { %10 = vsyncpa [#allocation4], 0  ;;  %s312_s15 = smov [#allocation5]   ;;  %s15_s19 = sshll.u32 %s358_s0, 4  ;;  %s16_s19 = int_to_ptr.hbm [resolvable:$true] %s15_s19 }
   0x3   :  { %s30_s16 = sshll.u32 %s312_s15, 4  ;;  %s313_s20 = smov 256   ;;  %s31_s16 = int_to_ptr.vmem [resolvable:$true] %s30_s16 }
   0x4   :  { %s314_s21 = smov 16   ;;  %s315_s22 = smov [#allocation2]  }
   0x5   :  { %36 = dma.hbm_to_vmem [thread:$0]  %s29_s14, 4096, %s31_s16, [#allocation6], %s313_s20, %s313_s20, %s314_s21  }
   0x6   :  { %s17_s23 = sshll.u32 %s315_s22, 4  ;;  %s316_s1 = smov 128   ;;  %s18_s23 = int_to_ptr.vmem [resolvable:$true] %s17_s23 }
   0x7   :  { %s317_s24 = smov 8   ;;  %s42_s27 = sshll.u32 %s360_s2, 4  ;;  %s43_s27 = int_to_ptr.hbm [resolvable:$true] %s42_s27 }
   0x8   :  { %23 = dma.hbm_to_vmem [thread:$0]  %s16_s19, 256, %s18_s23, [#allocation3], %s316_s1, %s316_s1, %s317_s24  }
   0x9   :  { %s318_s28 = smov [#allocation7]  }
   0xa   :  { %s44_s0 = sshll.u32 %s318_s28, 4  ;;  %s45_s0 = int_to_ptr.vmem [resolvable:$true] %s44_s0 }
   0xb   :  { %47 = dma.hbm_to_vmem [thread:$0]  %s43_s27, 32, %s45_s0, [#allocation6]  }
   0xc   :  { %306 = dma.done.wait [#allocation3], 256  }
   0xd   :  { %307 = vsyncadd [#allocation3], 4294967040 }
   0xe   :  { %308 = dma.done.wait [#allocation6], 4128  }
   0xf   :  { %309 = vsyncadd [#allocation6], 4294963168  ;;  %v92_v0 = vld [vmem:[#allocation5 + $0xf0] sm:$0xff]  ;;  %v93_v1 = vld [vmem:[#allocation5 + $0xf8] sm:$0xff]  ;;  %s319_s2 = smov [#allocation8]   ;;  %s156_s5 = sshll.u32 %s361_s3, 4  ;;  %s157_s5 = int_to_ptr.hbm [resolvable:$true] %s156_s5 }
  0x10   :  { %v90_v2 = vld [vmem:[#allocation5 + $0xe0] sm:$0xff]  ;;  %170 = vmatpush.msra.mxu2 %v92_v0  ;;  %186 = vmatpush.msra.mxu3 %v93_v1  ;;  %v91_v3 = vld [vmem:[#allocation5 + $0xe8] sm:$0xff]  ;;  %v88_v4 = vld [vmem:[#allocation5 + $0xd0] sm:$0xff]  ;;  %s154_s29 = sshll.u32 %s319_s2, 4  ;;  %s155_s29 = int_to_ptr.vmem [resolvable:$true] %s154_s29 }
  0x11   :  { %v89_v5 = vld [vmem:[#allocation5 + $0xd8] sm:$0xff]  ;;  %100 = vmatpush.msra.mxu0 %v92_v0  ;;  %123 = vmatpush.msra.mxu1 %v93_v1  ;;  %v86_v6 = vld [vmem:[#allocation5 + $0xc0] sm:$0xff]  ;;  %v87_v7 = vld [vmem:[#allocation5 + $0xc8] sm:$0xff] }
  0x12   :  { %171 = vmatpush.msra.mxu2 %v90_v2  ;;  %187 = vmatpush.msra.mxu3 %v91_v3  ;;  %v84_v8 = vld [vmem:[#allocation5 + $0xb0] sm:$0xff]  ;;  %v85_v9 = vld [vmem:[#allocation5 + $0xb8] sm:$0xff]  ;;  %v82_v10 = vld [vmem:[#allocation5 + $0xa0] sm:$0xff] }
  0x13   :  { %101 = vmatpush.msra.mxu0 %v90_v2  ;;  %124 = vmatpush.msra.mxu1 %v91_v3  ;;  %v83_v11 = vld [vmem:[#allocation5 + $0xa8] sm:$0xff]  ;;  %v80_v12 = vld [vmem:[#allocation5 + $0x90] sm:$0xff]  ;;  %v81_v13 = vld [vmem:[#allocation5 + $0x98] sm:$0xff] }
  0x14   :  { %172 = vmatpush.msra.mxu2 %v88_v4  ;;  %188 = vmatpush.msra.mxu3 %v89_v5  ;;  %v78_v14 = vld [vmem:[#allocation5 + $0x80] sm:$0xff]  ;;  %v79_v15 = vld [vmem:[#allocation5 + $0x88] sm:$0xff]  ;;  %v76_v16 = vld [vmem:[#allocation5 + $0x70] sm:$0xff] }
  0x15   :  { %102 = vmatpush.msra.mxu0 %v88_v4  ;;  %125 = vmatpush.msra.mxu1 %v89_v5  ;;  %v77_v17 = vld [vmem:[#allocation5 + $0x78] sm:$0xff]  ;;  %v74_v18 = vld [vmem:[#allocation5 + $0x60] sm:$0xff]  ;;  %v75_v19 = vld [vmem:[#allocation5 + $0x68] sm:$0xff] }
  0x16   :  { %173 = vmatpush.msra.mxu2 %v86_v6  ;;  %189 = vmatpush.msra.mxu3 %v87_v7  ;;  %v72_v20 = vld [vmem:[#allocation5 + $0x50] sm:$0xff]  ;;  %v73_v21 = vld [vmem:[#allocation5 + $0x58] sm:$0xff]  ;;  %v70_v22 = vld [vmem:[#allocation5 + $0x40] sm:$0xff] }
  0x17   :  { %103 = vmatpush.msra.mxu0 %v86_v6  ;;  %126 = vmatpush.msra.mxu1 %v87_v7  ;;  %v71_v23 = vld [vmem:[#allocation5 + $0x48] sm:$0xff]  ;;  %v68_v24 = vld [vmem:[#allocation5 + $0x30] sm:$0xff]  ;;  %v69_v25 = vld [vmem:[#allocation5 + $0x38] sm:$0xff] }
  0x18   :  { %174 = vmatpush.msra.mxu2 %v84_v8  ;;  %190 = vmatpush.msra.mxu3 %v85_v9  ;;  %v66_v26 = vld [vmem:[#allocation5 + $0x20] sm:$0xff]  ;;  %v67_v27 = vld [vmem:[#allocation5 + $0x28] sm:$0xff]  ;;  %v64_v28 = vld [vmem:[#allocation5 + $0x10] sm:$0xff] }
  0x19   :  { %104 = vmatpush.msra.mxu0 %v84_v8  ;;  %127 = vmatpush.msra.mxu1 %v85_v9  ;;  %v65_v29 = vld [vmem:[#allocation5 + $0x18] sm:$0xff]  ;;  %v62_v30 = vld [vmem:[#allocation5] sm:$0xff]  ;;  %v63_v31 = vld [vmem:[#allocation5 + $0x8] sm:$0xff] }
  0x1a   :  { %175 = vmatpush.msra.mxu2 %v82_v10  ;;  %191 = vmatpush.msra.mxu3 %v83_v11  ;;  %v61_v32 = vld [vmem:[#allocation2 + $0x8] sm:$0xff]  ;;  %v60_v33 = vld [vmem:[#allocation2] sm:$0xff]  ;;  %v94_v34 = vld [vmem:[#allocation7] sm:$0x3] }
  0x1b   :  { %105 = vmatpush.msra.mxu0 %v82_v10  ;;  %128 = vmatpush.msra.mxu1 %v83_v11  ;;  %v96_v35 = vperm.slane %v94_v34, 0  ;;  %v97_v36 = vperm.slane %v94_v34, 1 }
  0x1c   :  { %176 = vmatpush.msra.mxu2 %v80_v12  ;;  %192 = vmatpush.msra.mxu3 %v81_v13 }
  0x1d   :  { %106 = vmatpush.msra.mxu0 %v80_v12  ;;  %129 = vmatpush.msra.mxu1 %v81_v13 }
  0x1e   :  { %177 = vmatpush.msra.mxu2 %v78_v14  ;;  %193 = vmatpush.msra.mxu3 %v79_v15 }
  0x1f   :  { %107 = vmatpush.msra.mxu0 %v78_v14  ;;  %130 = vmatpush.msra.mxu1 %v79_v15 }
  0x20   :  { %178 = vmatpush.msra.mxu2 %v76_v16  ;;  %194 = vmatpush.msra.mxu3 %v77_v17 }
  0x21   :  { %108 = vmatpush.msra.mxu0 %v76_v16  ;;  %131 = vmatpush.msra.mxu1 %v77_v17 }
  0x22   :  { %179 = vmatpush.msra.mxu2 %v74_v18  ;;  %195 = vmatpush.msra.mxu3 %v75_v19 }
  0x23   :  { %109 = vmatpush.msra.mxu0 %v74_v18  ;;  %132 = vmatpush.msra.mxu1 %v75_v19 }
  0x24   :  { %180 = vmatpush.msra.mxu2 %v72_v20  ;;  %196 = vmatpush.msra.mxu3 %v73_v21 }
  0x25   :  { %110 = vmatpush.msra.mxu0 %v72_v20  ;;  %133 = vmatpush.msra.mxu1 %v73_v21 }
  0x26   :  { %181 = vmatpush.msra.mxu2 %v70_v22  ;;  %197 = vmatpush.msra.mxu3 %v71_v23 }
  0x27   :  { %111 = vmatpush.msra.mxu0 %v70_v22  ;;  %134 = vmatpush.msra.mxu1 %v71_v23 }
  0x28   :  { %182 = vmatpush.msra.mxu2 %v68_v24  ;;  %198 = vmatpush.msra.mxu3 %v69_v25 }
  0x29   :  { %112 = vmatpush.msra.mxu0 %v68_v24  ;;  %135 = vmatpush.msra.mxu1 %v69_v25 }
  0x2a   :  { %183 = vmatpush.msra.mxu2 %v66_v26  ;;  %199 = vmatpush.msra.mxu3 %v67_v27 }
  0x2b   :  { %113 = vmatpush.msra.mxu0 %v66_v26  ;;  %136 = vmatpush.msra.mxu1 %v67_v27 }
  0x2c   :  { %184 = vmatpush.msra.mxu2 %v64_v28  ;;  %200 = vmatpush.msra.mxu3 %v65_v29 }
  0x2d   :  { %114 = vmatpush.msra.mxu0 %v64_v28  ;;  %137 = vmatpush.msra.mxu1 %v65_v29 }
  0x2e   :  { %185 = vmatpush.msra.mxu2 %v62_v30  ;;  %201 = vmatpush.msra.mxu3 %v63_v31 }
  0x2f   :  { %119 = vmatmul.f32.vlgmr.msra.gmra.mxu2 %v61_v32  ;;  %142 = vmatmul.f32.vlgmr.msra.gmra.mxu3 %v61_v32 }
  0x30   :  { %115 = vmatpush.msra.mxu0 %v62_v30  ;;  %138 = vmatpush.msra.mxu1 %v63_v31 }
  0x31   :  { %116 = vmatmul.f32.vlgmr.msra.gmra.mxu0 %v60_v33  ;;  %139 = vmatmul.f32.vlgmr.msra.gmra.mxu1 %v60_v33 }
  0xae   :  { %v117_v37 = vpop.f32.mrf.mxu0  ;;  %v140_v38 = vpop.f32.mrf.mxu1 }
  0xaf   :  { %v118_v39 = vadd.f32 %v117_v37, %v96_v35  ;;  %v141_v40 = vadd.f32 %v140_v38, %v97_v36 }
  0xb1   :  { %146 = vst [vmem:[#allocation8] sm:$0xff] %v118_v39 }
  0xb2   :  { %v120_v41 = vpop.f32.mrf.mxu2  ;;  %147 = vst [vmem:[#allocation8 + $0x8] sm:$0xff] %v141_v40  ;;  %v143_v42 = vpop.f32.mrf.mxu3 }
  0xb3   :  { %v121_v43 = vadd.f32 %v120_v41, %v96_v35  ;;  %v144_v44 = vadd.f32 %v143_v42, %v97_v36 }
  0xb5   :  { %148 = vst [vmem:[#allocation8 + $0x10] sm:$0xff] %v121_v43 }
  0xb6   :  { %149 = vst [vmem:[#allocation8 + $0x18] sm:$0xff] %v144_v44 }
  0xb7   :  { %162 = dma.vmem_to_hbm [thread:$0]  %s155_s29, 512, %s157_s5, [#allocation4], %s313_s20, %s313_s20, %s314_s21  }
  0xb8   :  { %310 = dma.done.wait [#allocation4], 512  }
  0xb9   :  { %311 = vsyncadd [#allocation4], 4294966784 }
  0xba   :  { %167 = vsyncpa [#allocation3], 1 }
  0xbb   :  { %168 = vsyncpa [#allocation6], 1 }
  0xbc   :  { %169 = vsyncpa [#allocation4], 1 }

</bundles_post_ra>
